<compile_context>
chip_gen: v7x
topology: tpu7x:2x2x1
jax: 0.10.0
libtpu: 0.0.40
codegen_flags: <defaults>
</compile_context>

<pallas_src>
from math import ceil
import functools

import jax
import jax.numpy as jnp
from jax.experimental import pallas as pl
from jax.experimental.pallas import tpu as pltpu

LANE = 128          # vreg lane width
SUBLANE = 8         # f32 vreg sublane count
MAX_BATCH_TILE = 512
VMEM_BUDGET_BYTES = 40 * 1024 * 1024   # stay well under v7x's 64 MiB physical VMEM


def _round_up(n, m):
    return ((n + m - 1) // m) * m


# --------------------------------------------------------------------------- #
# Fused kernel: all layers in one body; intermediates never leave VMEM/vregs.
# refs = (x_ref, w_0, b_0, w_1, b_1, ..., w_{L-1}, b_{L-1}, o_ref)
# --------------------------------------------------------------------------- #
def _fused_encoder_kernel(*refs, num_layers, slope, mxu_dtype):
    x_ref = refs[0]
    o_ref = refs[-1]
    y = x_ref[...].astype(jnp.float32)
    for l in range(num_layers):
        w_ref = refs[1 + 2 * l]
        b_ref = refs[2 + 2 * l]
        # MXU: bf16 x bf16 -> f32 accumulation (bf16 MXU inputs are native on v5e/v6e/v7x).
        y = jnp.dot(y.astype(mxu_dtype), w_ref[...],
                    preferred_element_type=jnp.float32)
        y = y + b_ref[...].astype(jnp.float32)   # (1, F) broadcast, f32 on the VPU
        y = jnp.maximum(y, slope * y)            # LeakyReLU as a single vmax
    o_ref[...] = y.astype(o_ref.dtype)


# --------------------------------------------------------------------------- #
# One-time parameter preparation (hoisted out of the per-call forward path).
# --------------------------------------------------------------------------- #
def prepare_params(params, *, mxu_dtype=jnp.bfloat16, lane_multiple=LANE):
    """Pad weights/biases to lane-dense shapes and cast weights for the MXU. Run ONCE.

    params: list of (W [f_in, f_out], b [f_out]) such that y = x @ W + b.
    Returns (padded_params, meta).
    """
    in_features = params[0][0].shape[0]
    f_out = [w.shape[1] for (w, _) in params]
    # Layer-0 contraction dim stays at the real in_features so x needs no lane padding;
    # later contraction dims match the (padded) previous layer's output width.
    # NOTE: for production widths >=128 on v6e/v7x, lane_multiple=256 matches the 256x256
    # MXU tile; 128 is optimal for the tiny dims here and for v5e's 128x128 MXUs.
    p_out = [_round_up(d, lane_multiple) for d in f_out]
    p_in = [in_features] + p_out[:-1]

    padded = []
    for l, (w, b) in enumerate(params):
        wp = (jnp.zeros((p_in[l], p_out[l]), mxu_dtype)
              .at[: w.shape[0], : w.shape[1]].set(w.astype(mxu_dtype)))
        bp = (jnp.zeros((1, p_out[l]), jnp.float32)
              .at[0, : b.shape[0]].set(b.astype(jnp.float32)))
        padded.append((wp, bp))

    meta = dict(in_features=in_features, latent=f_out[-1],
                p_in=tuple(p_in), p_out=tuple(p_out))
    return padded, meta


def _resident_spec(shape, single_buffer):
    # Grid-invariant operands (weights/biases): same block for every grid step.
    if single_buffer:
        return pl.BlockSpec(shape, lambda i: (0, 0), pipeline_mode=pl.Buffered(1))
    return pl.BlockSpec(shape, lambda i: (0, 0))


def _pick_batch_tile(batch, vmem_fits):
    b8 = _round_up(batch, SUBLANE)
    if b8 >= 2 * SUBLANE:
        # Aim for >=2 grid blocks so dimension_semantics=("parallel",) actually shards
        # the batch across v7x's two TensorCores (single-TC v5e/v6e unaffected).
        tb = min(MAX_BATCH_TILE, _round_up(-(-b8 // 2), SUBLANE))
    else:
        tb = b8
    # Shrink until padded-row waste is <= ~12.5% of the real batch.
    while tb > SUBLANE and (_round_up(b8, tb) - b8) * 8 > b8:
        tb = _round_up(tb // 2, SUBLANE)
    # Shrink until the VMEM working set fits the budget.
    # TODO(synk): extremely wide layers could still not fit at tb == SUBLANE; that regime
    # would need an extra K/N grid axis over the weights (not needed for this module).
    while tb > SUBLANE and not vmem_fits(tb):
        tb = _round_up(tb // 2, SUBLANE)
    return tb, _round_up(b8, tb)


def simple_fc_encoder_forward(x, prepared, *, slope=0.01, single_buffer_weights=True):
    """LeakyReLU(... LeakyReLU(x @ W0 + b0) ... @ W_{L-1} + b_{L-1}) in one pallas_call."""
    padded_params, meta = prepared
    B, in_features = x.shape
    assert in_features == meta["in_features"]
    num_layers = len(padded_params)
    p_in, p_out = meta["p_in"], meta["p_out"]
    out_dtype = x.dtype
    x_isz = jnp.dtype(x.dtype).itemsize
    o_isz = jnp.dtype(out_dtype).itemsize
    mxu_dtype = padded_params[0][0].dtype

    w_bytes = sum(w.size * w.dtype.itemsize + b.size * b.dtype.itemsize
                  for (w, b) in padded_params)
    w_buffers = 1 if single_buffer_weights else 2

    def vmem_fits(tb):
        # Double-buffered streamed tiles (input + output) in their storage dtypes ...
        io = 2 * tb * (in_features * x_isz + p_out[-1] * o_isz)
        # ... plus f32 working activations held between layers (worst consecutive
        # layer-in/layer-out pair, plus the f32 copy of the input tile) ...
        inter = 4 * tb * (max(pi + po for pi, po in zip(p_in, p_out)) + in_features)
        # ... plus resident weights/biases (single- or double-buffered).
        return io + inter + w_buffers * w_bytes <= VMEM_BUDGET_BYTES

    tb, b_pad = _pick_batch_tile(B, vmem_fits)

    # Row-pad the input only when needed (guarded: no extra HBM pass when aligned).
    # Padded rows compute bias-propagated garbage but are sliced off below and never
    # reduced over; padded output LANES are exactly 0 (zero weight cols/rows + zero
    # bias, and LeakyReLU(0) == 0), so padding never leaks into real results.
    if b_pad != B:
        x_in = jnp.zeros((b_pad, in_features), x.dtype).at[:B, :].set(x)
    else:
        x_in = x

    flat_params = [t for pair in padded_params for t in pair]
    flops = 2 * b_pad * sum(pi * po for pi, po in zip(p_in, p_out))
    bytes_accessed = (b_pad * in_features * x_isz
                      + b_pad * p_out[-1] * o_isz + w_bytes)

    def build(single_buffer):
        in_specs = [pl.BlockSpec((tb, in_features), lambda i: (i, 0))]
        for (wp, bp) in padded_params:
            in_specs.append(_resident_spec(wp.shape, single_buffer))
            in_specs.append(_resident_spec(bp.shape, single_buffer))
        return pl.pallas_call(
            functools.partial(_fused_encoder_kernel, num_layers=num_layers,
                              slope=slope, mxu_dtype=mxu_dtype),
            out_shape=jax.ShapeDtypeStruct((b_pad, p_out[-1]), out_dtype),
            grid=(b_pad // tb,),
            in_specs=in_specs,
            out_specs=pl.BlockSpec((tb, p_out[-1]), lambda i: (i, 0)),
            compiler_params=pltpu.CompilerParams(
                dimension_semantics=("parallel",),      # v7x: shard batch over 2 TCs
                vmem_limit_bytes=VMEM_BUDGET_BYTES + (8 << 20),
            ),
            cost_estimate=pl.CostEstimate(
                flops=flops, transcendentals=0, bytes_accessed=bytes_accessed),
        )

    try:
        out_padded = build(single_buffer_weights)(x_in, *flat_params)
    except Exception:
        # pl.Buffered(1) not supported by this JAX build -> default (double) buffering.
        out_padded = build(False)(x_in, *flat_params)

    latent = meta["latent"]
    if b_pad == B and p_out[-1] == latent:
        return out_padded                 # already aligned: no extra slice/copy
    return out_padded[:B, :latent]


# --------------------------------------------------------------------------- #
# Module construction helpers (replicate SimpleFCEncoder.__init__ arithmetic).
# --------------------------------------------------------------------------- #
def encoder_layer_dims(in_features, num_layers, latent_size):
    rdf = (in_features - latent_size) / float(num_layers)
    dims = []
    in_l = in_features
    out_l1 = in_l - rdf
    for _ in range(num_layers):
        out_c = int(ceil(out_l1))
        dims.append((int(in_l), out_c))
        in_l = out_c
        out_l1 = in_l - rdf
    return dims


def init_params(key, dims, dtype=jnp.float32):
    """PyTorch-style init: U(-1/sqrt(fan_in), 1/sqrt(fan_in)).
    Weights stored as [F_in, F_out] (transpose of nn.Linear.weight) so y = x @ W + b."""
    params = []
    for (f_in, f_out) in dims:
        key, kw, kb = jax.random.split(key, 3)
        bound = 1.0 / (f_in ** 0.5)
        w = jax.random.uniform(kw, (f_in, f_out), dtype, minval=-bound, maxval=bound)
        b = jax.random.uniform(kb, (f_out,), dtype, minval=-bound, maxval=bound)
        params.append((w, b))
    return params


if __name__ == "__main__":
    in_features, num_layers, latent_size = 32, 3, 8
    batch = 2

    dims = encoder_layer_dims(in_features, num_layers, latent_size)  # [(32,24),(24,16),(16,8)]

    key = jax.random.PRNGKey(0)
    key, kx = jax.random.split(key)
    x = jax.random.normal(kx, (batch, in_features), dtype=jnp.float32)
    params = init_params(key, dims)

    prepared = prepare_params(params)            # one-time padding + bf16 cast
    out = simple_fc_encoder_forward(x, prepared)
    out = jax.block_until_ready(out)
    assert out.shape == (batch, latent_size), out.shape

    # Reference 1: pure JAX with the SAME numerics as the kernel (bf16 MXU inputs,
    # f32 accumulation, f32 bias + LeakyReLU).  Tight tolerance.
    ref = x.astype(jnp.float32)
    for (w, b) in params:
        y = jnp.dot(ref.astype(jnp.bfloat16), w.astype(jnp.bfloat16),
                    preferred_element_type=jnp.float32) + b
        ref = jnp.maximum(y, 0.01 * y)
    assert jnp.allclose(out, ref, atol=5e-3, rtol=5e-3), (
        float(jnp.max(jnp.abs(out - ref))))

    # Reference 2: full-f32 math (matches the PyTorch module exactly).  Loose tolerance
    # only accounts for the intentional bf16 MXU feeding.
    ref_f32 = x
    for (w, b) in params:
        y = ref_f32 @ w + b
        ref_f32 = jnp.maximum(y, 0.01 * y)
    assert jnp.allclose(out, ref_f32, atol=5e-2, rtol=5e-2), (
        float(jnp.max(jnp.abs(out - ref_f32))))

    print("KERNEL_OK")
</pallas_src>

<mosaic_0001>
module attributes {stable_mosaic.version = 11 : i64} {
  func.func @_fused_encoder_kernel(%arg0: i32, %arg1: memref<8x32xf32, #tpu.memory_space<vmem>>, %arg2: memref<32x128xbf16, #tpu.memory_space<vmem>>, %arg3: memref<1x128xf32, #tpu.memory_space<vmem>>, %arg4: memref<128x128xbf16, #tpu.memory_space<vmem>>, %arg5: memref<1x128xf32, #tpu.memory_space<vmem>>, %arg6: memref<128x128xbf16, #tpu.memory_space<vmem>>, %arg7: memref<1x128xf32, #tpu.memory_space<vmem>>, %arg8: memref<8x128xf32, #tpu.memory_space<vmem>>) attributes {dimension_semantics = [#tpu.dimension_semantics<parallel>], iteration_bounds = array<i64: 1>, scalar_prefetch = 0 : i64, scratch_operands = 0 : i64, tpu.core_type = #tpu.core_type<tc>, window_params = [{transform_indices = @transform_0, window_bounds = array<i64: 8, 32>}, {pipeline_mode = #tpu.pipeline_mode<synchronous>, transform_indices = @transform_1, window_bounds = array<i64: 32, 128>}, {pipeline_mode = #tpu.pipeline_mode<synchronous>, transform_indices = @transform_2, window_bounds = array<i64: 1, 128>}, {pipeline_mode = #tpu.pipeline_mode<synchronous>, transform_indices = @transform_3, window_bounds = array<i64: 128, 128>}, {pipeline_mode = #tpu.pipeline_mode<synchronous>, transform_indices = @transform_4, window_bounds = array<i64: 1, 128>}, {pipeline_mode = #tpu.pipeline_mode<synchronous>, transform_indices = @transform_5, window_bounds = array<i64: 128, 128>}, {pipeline_mode = #tpu.pipeline_mode<synchronous>, transform_indices = @transform_6, window_bounds = array<i64: 1, 128>}, {transform_indices = @transform_7, window_bounds = array<i64: 8, 128>}]} {
    %c0 = arith.constant 0 : index
    %c0_0 = arith.constant 0 : index
    %0 = vector.load %arg1[%c0, %c0_0] : memref<8x32xf32, #tpu.memory_space<vmem>>, vector<8x32xf32>
    %1 = arith.truncf %0 : vector<8x32xf32> to vector<8x32xbf16>
    %c0_1 = arith.constant 0 : index
    %c0_2 = arith.constant 0 : index
    %2 = vector.load %arg2[%c0_1, %c0_2] : memref<32x128xbf16, #tpu.memory_space<vmem>>, vector<32x128xbf16>
    %cst = arith.constant dense<0.000000e+00> : vector<8x128xf32>
    %3 = tpu.matmul %1, %2, %cst {dimension_numbers = #tpu.dot_dimension_numbers<[1], [0], [0], [1], [0, 0, 1, 1], [], []>} : vector<8x32xbf16>, vector<32x128xbf16>, vector<8x128xf32> -> vector<8x128xf32>
    %c0_3 = arith.constant 0 : index
    %c0_4 = arith.constant 0 : index
    %4 = vector.load %arg3[%c0_3, %c0_4] : memref<1x128xf32, #tpu.memory_space<vmem>>, vector<1x128xf32>
    %5 = vector.broadcast %4 : vector<1x128xf32> to vector<8x128xf32>
    %6 = arith.addf %3, %5 : vector<8x128xf32>
    %cst_5 = arith.constant 0.00999999977 : f32
    %7 = vector.broadcast %cst_5 : f32 to vector<8x128xf32>
    %8 = arith.mulf %7, %6 : vector<8x128xf32>
    %9 = arith.maximumf %6, %8 : vector<8x128xf32>
    %10 = arith.truncf %9 : vector<8x128xf32> to vector<8x128xbf16>
    %c0_6 = arith.constant 0 : index
    %c0_7 = arith.constant 0 : index
    %11 = vector.load %arg4[%c0_6, %c0_7] : memref<128x128xbf16, #tpu.memory_space<vmem>>, vector<128x128xbf16>
    %cst_8 = arith.constant dense<0.000000e+00> : vector<8x128xf32>
    %12 = tpu.matmul %10, %11, %cst_8 {dimension_numbers = #tpu.dot_dimension_numbers<[1], [0], [0], [1], [0, 0, 1, 1], [], []>} : vector<8x128xbf16>, vector<128x128xbf16>, vector<8x128xf32> -> vector<8x128xf32>
    %c0_9 = arith.constant 0 : index
    %c0_10 = arith.constant 0 : index
    %13 = vector.load %arg5[%c0_9, %c0_10] : memref<1x128xf32, #tpu.memory_space<vmem>>, vector<1x128xf32>
    %14 = vector.broadcast %13 : vector<1x128xf32> to vector<8x128xf32>
    %15 = arith.addf %12, %14 : vector<8x128xf32>
    %cst_11 = arith.constant 0.00999999977 : f32
    %16 = vector.broadcast %cst_11 : f32 to vector<8x128xf32>
    %17 = arith.mulf %16, %15 : vector<8x128xf32>
    %18 = arith.maximumf %15, %17 : vector<8x128xf32>
    %19 = arith.truncf %18 : vector<8x128xf32> to vector<8x128xbf16>
    %c0_12 = arith.constant 0 : index
    %c0_13 = arith.constant 0 : index
    %20 = vector.load %arg6[%c0_12, %c0_13] : memref<128x128xbf16, #tpu.memory_space<vmem>>, vector<128x128xbf16>
    %cst_14 = arith.constant dense<0.000000e+00> : vector<8x128xf32>
    %21 = tpu.matmul %19, %20, %cst_14 {dimension_numbers = #tpu.dot_dimension_numbers<[1], [0], [0], [1], [0, 0, 1, 1], [], []>} : vector<8x128xbf16>, vector<128x128xbf16>, vector<8x128xf32> -> vector<8x128xf32>
    %c0_15 = arith.constant 0 : index
    %c0_16 = arith.constant 0 : index
    %22 = vector.load %arg7[%c0_15, %c0_16] : memref<1x128xf32, #tpu.memory_space<vmem>>, vector<1x128xf32>
    %23 = vector.broadcast %22 : vector<1x128xf32> to vector<8x128xf32>
    %24 = arith.addf %21, %23 : vector<8x128xf32>
    %cst_17 = arith.constant 0.00999999977 : f32
    %25 = vector.broadcast %cst_17 : f32 to vector<8x128xf32>
    %26 = arith.mulf %25, %24 : vector<8x128xf32>
    %27 = arith.maximumf %24, %26 : vector<8x128xf32>
    %c0_18 = arith.constant 0 : index
    %c0_19 = arith.constant 0 : index
    %28 = vector.load %arg8[%c0_18, %c0_19] : memref<8x128xf32, #tpu.memory_space<vmem>>, vector<8x128xf32>
    tpu.vector_store %arg8[%c0_18, %c0_19], %27 {strides = array<i32>} : memref<8x128xf32, #tpu.memory_space<vmem>>, vector<8x128xf32>,
    return
  }
  func.func @transform_0(%arg0: i32) -> (i32, i32) {
    %c0_i32 = arith.constant 0 : i32
    %c0_i32_0 = arith.constant 0 : i32
    return %arg0, %c0_i32 : i32, i32
  }
  func.func @transform_1(%arg0: i32) -> (i32, i32) {
    %c0_i32 = arith.constant 0 : i32
    %c0_i32_0 = arith.constant 0 : i32
    %c0_i32_1 = arith.constant 0 : i32
    return %c0_i32, %c0_i32_0 : i32, i32
  }
  func.func @transform_2(%arg0: i32) -> (i32, i32) {
    %c0_i32 = arith.constant 0 : i32
    %c0_i32_0 = arith.constant 0 : i32
    %c0_i32_1 = arith.constant 0 : i32
    return %c0_i32, %c0_i32_0 : i32, i32
  }
  func.func @transform_3(%arg0: i32) -> (i32, i32) {
    %c0_i32 = arith.constant 0 : i32
    %c0_i32_0 = arith.constant 0 : i32
    %c0_i32_1 = arith.constant 0 : i32
    return %c0_i32, %c0_i32_0 : i32, i32
  }
  func.func @transform_4(%arg0: i32) -> (i32, i32) {
    %c0_i32 = arith.constant 0 : i32
    %c0_i32_0 = arith.constant 0 : i32
    %c0_i32_1 = arith.constant 0 : i32
    return %c0_i32, %c0_i32_0 : i32, i32
  }
  func.func @transform_5(%arg0: i32) -> (i32, i32) {
    %c0_i32 = arith.constant 0 : i32
    %c0_i32_0 = arith.constant 0 : i32
    %c0_i32_1 = arith.constant 0 : i32
    return %c0_i32, %c0_i32_0 : i32, i32
  }
  func.func @transform_6(%arg0: i32) -> (i32, i32) {
    %c0_i32 = arith.constant 0 : i32
    %c0_i32_0 = arith.constant 0 : i32
    %c0_i32_1 = arith.constant 0 : i32
    return %c0_i32, %c0_i32_0 : i32, i32
  }
  func.func @transform_7(%arg0: i32) -> (i32, i32) {
    %c0_i32 = arith.constant 0 : i32
    %c0_i32_0 = arith.constant 0 : i32
    return %arg0, %c0_i32 : i32, i32
  }
}

module attributes {stable_mosaic.version = 11 : i64} {
  func.func @_fused_encoder_kernel(%arg0: i32, %arg1: memref<8x32xf32, #tpu.memory_space<vmem>>, %arg2: memref<32x128xbf16, #tpu.memory_space<vmem>>, %arg3: memref<1x128xf32, #tpu.memory_space<vmem>>, %arg4: memref<128x128xbf16, #tpu.memory_space<vmem>>, %arg5: memref<1x128xf32, #tpu.memory_space<vmem>>, %arg6: memref<128x128xbf16, #tpu.memory_space<vmem>>, %arg7: memref<1x128xf32, #tpu.memory_space<vmem>>, %arg8: memref<8x128xf32, #tpu.memory_space<vmem>>) attributes {dimension_semantics = [#tpu.dimension_semantics<parallel>], iteration_bounds = array<i64: 1>, scalar_prefetch = 0 : i64, scratch_operands = 0 : i64, tpu.core_type = #tpu.core_type<tc>, window_params = [{transform_indices = @transform_0, window_bounds = array<i64: 8, 32>}, {pipeline_mode = #tpu.pipeline_mode<synchronous>, transform_indices = @transform_1, window_bounds = array<i64: 32, 128>}, {pipeline_mode = #tpu.pipeline_mode<synchronous>, transform_indices = @transform_2, window_bounds = array<i64: 1, 128>}, {pipeline_mode = #tpu.pipeline_mode<synchronous>, transform_indices = @transform_3, window_bounds = array<i64: 128, 128>}, {pipeline_mode = #tpu.pipeline_mode<synchronous>, transform_indices = @transform_4, window_bounds = array<i64: 1, 128>}, {pipeline_mode = #tpu.pipeline_mode<synchronous>, transform_indices = @transform_5, window_bounds = array<i64: 128, 128>}, {pipeline_mode = #tpu.pipeline_mode<synchronous>, transform_indices = @transform_6, window_bounds = array<i64: 1, 128>}, {transform_indices = @transform_7, window_bounds = array<i64: 8, 128>}]} {
    %c0 = arith.constant 0 : index
    %c0_0 = arith.constant 0 : index
    %0 = vector.load %arg1[%c0, %c0_0] : memref<8x32xf32, #tpu.memory_space<vmem>>, vector<8x32xf32>
    %1 = arith.truncf %0 : vector<8x32xf32> to vector<8x32xbf16>
    %c0_1 = arith.constant 0 : index
    %c0_2 = arith.constant 0 : index
    %2 = vector.load %arg2[%c0_1, %c0_2] : memref<32x128xbf16, #tpu.memory_space<vmem>>, vector<32x128xbf16>
    %cst = arith.constant dense<0.000000e+00> : vector<8x128xf32>
    %3 = tpu.matmul %1, %2, %cst {dimension_numbers = #tpu.dot_dimension_numbers<[1], [0], [0], [1], [0, 0, 1, 1], [], []>} : vector<8x32xbf16>, vector<32x128xbf16>, vector<8x128xf32> -> vector<8x128xf32>
    %c0_3 = arith.constant 0 : index
    %c0_4 = arith.constant 0 : index
    %4 = vector.load %arg3[%c0_3, %c0_4] : memref<1x128xf32, #tpu.memory_space<vmem>>, vector<1x128xf32>
    %5 = vector.broadcast %4 : vector<1x128xf32> to vector<8x128xf32>
    %6 = arith.addf %3, %5 : vector<8x128xf32>
    %cst_5 = arith.constant 0.00999999977 : f32
    %7 = vector.broadcast %cst_5 : f32 to vector<8x128xf32>
    %8 = arith.mulf %7, %6 : vector<8x128xf32>
    %9 = arith.maximumf %6, %8 : vector<8x128xf32>
    %10 = arith.truncf %9 : vector<8x128xf32> to vector<8x128xbf16>
    %c0_6 = arith.constant 0 : index
    %c0_7 = arith.constant 0 : index
    %11 = vector.load %arg4[%c0_6, %c0_7] : memref<128x128xbf16, #tpu.memory_space<vmem>>, vector<128x128xbf16>
    %cst_8 = arith.constant dense<0.000000e+00> : vector<8x128xf32>
    %12 = tpu.matmul %10, %11, %cst_8 {dimension_numbers = #tpu.dot_dimension_numbers<[1], [0], [0], [1], [0, 0, 1, 1], [], []>} : vector<8x128xbf16>, vector<128x128xbf16>, vector<8x128xf32> -> vector<8x128xf32>
    %c0_9 = arith.constant 0 : index
    %c0_10 = arith.constant 0 : index
    %13 = vector.load %arg5[%c0_9, %c0_10] : memref<1x128xf32, #tpu.memory_space<vmem>>, vector<1x128xf32>
    %14 = vector.broadcast %13 : vector<1x128xf32> to vector<8x128xf32>
    %15 = arith.addf %12, %14 : vector<8x128xf32>
    %cst_11 = arith.constant 0.00999999977 : f32
    %16 = vector.broadcast %cst_11 : f32 to vector<8x128xf32>
    %17 = arith.mulf %16, %15 : vector<8x128xf32>
    %18 = arith.maximumf %15, %17 : vector<8x128xf32>
    %19 = arith.truncf %18 : vector<8x128xf32> to vector<8x128xbf16>
    %c0_12 = arith.constant 0 : index
    %c0_13 = arith.constant 0 : index
    %20 = vector.load %arg6[%c0_12, %c0_13] : memref<128x128xbf16, #tpu.memory_space<vmem>>, vector<128x128xbf16>
    %cst_14 = arith.constant dense<0.000000e+00> : vector<8x128xf32>
    %21 = tpu.matmul %19, %20, %cst_14 {dimension_numbers = #tpu.dot_dimension_numbers<[1], [0], [0], [1], [0, 0, 1, 1], [], []>} : vector<8x128xbf16>, vector<128x128xbf16>, vector<8x128xf32> -> vector<8x128xf32>
    %c0_15 = arith.constant 0 : index
    %c0_16 = arith.constant 0 : index
    %22 = vector.load %arg7[%c0_15, %c0_16] : memref<1x128xf32, #tpu.memory_space<vmem>>, vector<1x128xf32>
    %23 = vector.broadcast %22 : vector<1x128xf32> to vector<8x128xf32>
    %24 = arith.addf %21, %23 : vector<8x128xf32>
    %cst_17 = arith.constant 0.00999999977 : f32
    %25 = vector.broadcast %cst_17 : f32 to vector<8x128xf32>
    %26 = arith.mulf %25, %24 : vector<8x128xf32>
    %27 = arith.maximumf %24, %26 : vector<8x128xf32>
    %c0_18 = arith.constant 0 : index
    %c0_19 = arith.constant 0 : index
    %28 = vector.load %arg8[%c0_18, %c0_19] : memref<8x128xf32, #tpu.memory_space<vmem>>, vector<8x128xf32>
    tpu.vector_store %arg8[%c0_18, %c0_19], %27 {strides = array<i32>} : memref<8x128xf32, #tpu.memory_space<vmem>>, vector<8x128xf32>,
    return
  }
  func.func @transform_0(%arg0: i32) -> (i32, i32) {
    %c0_i32 = arith.constant 0 : i32
    %c0_i32_0 = arith.constant 0 : i32
    return %arg0, %c0_i32 : i32, i32
  }
  func.func @transform_1(%arg0: i32) -> (i32, i32) {
    %c0_i32 = arith.constant 0 : i32
    %c0_i32_0 = arith.constant 0 : i32
    %c0_i32_1 = arith.constant 0 : i32
    return %c0_i32, %c0_i32_0 : i32, i32
  }
  func.func @transform_2(%arg0: i32) -> (i32, i32) {
    %c0_i32 = arith.constant 0 : i32
    %c0_i32_0 = arith.constant 0 : i32
    %c0_i32_1 = arith.constant 0 : i32
    return %c0_i32, %c0_i32_0 : i32, i32
  }
  func.func @transform_3(%arg0: i32) -> (i32, i32) {
    %c0_i32 = arith.constant 0 : i32
    %c0_i32_0 = arith.constant 0 : i32
    %c0_i32_1 = arith.constant 0 : i32
    return %c0_i32, %c0_i32_0 : i32, i32
  }
  func.func @transform_4(%arg0: i32) -> (i32, i32) {
    %c0_i32 = arith.constant 0 : i32
    %c0_i32_0 = arith.constant 0 : i32
    %c0_i32_1 = arith.constant 0 : i32
    return %c0_i32, %c0_i32_0 : i32, i32
  }
  func.func @transform_5(%arg0: i32) -> (i32, i32) {
    %c0_i32 = arith.constant 0 : i32
    %c0_i32_0 = arith.constant 0 : i32
    %c0_i32_1 = arith.constant 0 : i32
    return %c0_i32, %c0_i32_0 : i32, i32
  }
  func.func @transform_6(%arg0: i32) -> (i32, i32) {
    %c0_i32 = arith.constant 0 : i32
    %c0_i32_0 = arith.constant 0 : i32
    %c0_i32_1 = arith.constant 0 : i32
    return %c0_i32, %c0_i32_0 : i32, i32
  }
  func.func @transform_7(%arg0: i32) -> (i32, i32) {
    %c0_i32 = arith.constant 0 : i32
    %c0_i32_0 = arith.constant 0 : i32
    return %arg0, %c0_i32 : i32, i32
  }
}

</mosaic_0001>

<bundles_post_ra>
// kernel: tpu_custom_call.1
= control target key start
LH: loop header
LB: loop body
LE: loop exit
PB: predicated region body
PF: predicated region fallthrough
CT: control target
= control target key end

     0   :  { %12 = vsyncpa [#allocation3], 0  ;;  %s785_s0 = inlined_call_operand.hbm [shape: f32[8,32], index: 0, kind: input, shape index: {}]   ;;  %s786_s1 = inlined_call_operand.hbm [shape: bf16[32,128], index: 1, kind: input, shape index: {}]   ;;  %s787_s2 = inlined_call_operand.vmem [shape: f32[1,128], index: 2, kind: input, shape index: {}]   ;;  %s788_s3 = inlined_call_operand.hbm [shape: bf16[128,128], index: 3, kind: input, shape index: {}]   ;;  %s789_s4 = inlined_call_operand.vmem [shape: f32[1,128], index: 4, kind: input, shape index: {}]   ;;  %s790_s5 = inlined_call_operand.hbm [shape: bf16[128,128], index: 5, kind: input, shape index: {}]   ;;  %s791_s6 = inlined_call_operand.vmem [shape: f32[1,128], index: 6, kind: input, shape index: {}]   ;;  %s792_s7 = inlined_call_operand.hbm [shape: f32[8,128], index: 7, kind: output, shape index: {}]  }
   0x1   :  { %13 = vsyncpa [#allocation6], 0 }
   0x2   :  { %14 = vsyncpa [#allocation9], 0 }
   0x3   :  { %15 = vsyncpa [#allocation4], 0  ;;  %s634_s24 = smov [#allocation5]   ;;  %s516_s28 = scalar_lea.hbm %s786_s1, 256 }
   0x4   :  { %s31_s25 = sshll.u32 %s634_s24, 4  ;;  %p517_p0 = scmp.ne.s32.totalorder %s786_s1, %s516_s28  ;;  %s32_s25 = int_to_ptr.vmem [resolvable:$true] %s31_s25 }
   0x5   :  { %p520_p1 = scmp.lt.u32.totalorder %s516_s28, %s786_s1 }
   0x7   :  { %p522_p2 = pnand %p520_p1, %p517_p0 }
   0x9   :  { %525 = shalt.err (!%p522_p2)
}
   0xa   :  { %s526_s10 = scalar_lea.vmem %s32_s25, 256  ;;  %p531_p4 = scmp.lt.s32.totalorder %s32_s25, %s32_s25 }
   0xb   :  { %p527_p3 = scmp.ne.s32.totalorder %s32_s25, %s526_s10  ;;  %p532_p5 = scmp.lt.s32.totalorder %s526_s10, %s526_s10 }
   0xd   :  { %p533_p6 = por %p532_p5, %p531_p4 }
   0xf   :  { %p534_p7 = pnand %p533_p6, %p527_p3 }
  0x11   :  { %537 = shalt.err (!%p534_p7)
}
  0x12   :  { %s635_s11 = smov 64   ;;  %s636_s12 = smov 4  }
  0x13   :  { %37 = dma.hbm_to_vmem [thread:$0]  %s786_s1, 256, %s32_s25, [#allocation6], %s635_s11, %s635_s11, %s636_s12  }
  0x14   :  { %s637_s15 = smov [#allocation2]   ;;  %s638_s17 = smov [#allocation7]  }
  0x15   :  { %s22_s16 = sshll.u32 %s637_s15, 4  ;;  %s45_s18 = sshll.u32 %s638_s17, 4  ;;  %s23_s16 = int_to_ptr.vmem [resolvable:$true] %s22_s16  ;;  %s46_s18 = int_to_ptr.vmem [resolvable:$true] %s45_s18 }
  0x16   :  { %s538_s21 = scalar_lea.hbm %s785_s0, 128 }
  0x17   :  { %p539_p8 = scmp.ne.s32.totalorder %s785_s0, %s538_s21  ;;  %p542_p9 = scmp.lt.u32.totalorder %s538_s21, %s785_s0 }
  0x19   :  { %p544_p10 = pnand %p542_p9, %p539_p8 }
  0x1b   :  { %547 = shalt.err (!%p544_p10)
}
  0x1c   :  { %s548_s1 = scalar_lea.vmem %s23_s16, 128  ;;  %p553_p12 = scmp.lt.s32.totalorder %s23_s16, %s23_s16 }
  0x1d   :  { %p549_p11 = scmp.ne.s32.totalorder %s23_s16, %s548_s1  ;;  %p554_p13 = scmp.lt.s32.totalorder %s548_s1, %s548_s1 }
  0x1f   :  { %p555_p0 = por %p554_p13, %p553_p12 }
  0x21   :  { %p556_p1 = pnand %p555_p0, %p549_p11 }
  0x23   :  { %559 = shalt.err (!%p556_p1)
}
  0x24   :  { %25 = dma.hbm_to_vmem [thread:$0]  %s785_s0, 128, %s23_s16, [#allocation3]  }
  0x25   :  { %s560_s30 = scalar_lea.hbm %s788_s3, 1024 }
  0x26   :  { %p561_p2 = scmp.ne.s32.totalorder %s788_s3, %s560_s30  ;;  %p564_p3 = scmp.lt.u32.totalorder %s560_s30, %s788_s3 }
  0x28   :  { %p566_p4 = pnand %p564_p3, %p561_p2 }
  0x2a   :  { %569 = shalt.err (!%p566_p4)
}
  0x2b   :  { %s570_s14 = scalar_lea.vmem %s46_s18, 1024  ;;  %p575_p6 = scmp.lt.s32.totalorder %s46_s18, %s46_s18 }
  0x2c   :  { %p571_p5 = scmp.ne.s32.totalorder %s46_s18, %s570_s14  ;;  %p576_p7 = scmp.lt.s32.totalorder %s570_s14, %s570_s14 }
  0x2e   :  { %p577_p8 = por %p576_p7, %p575_p6 }
  0x30   :  { %p578_p9 = pnand %p577_p8, %p571_p5 }
  0x32   :  { %581 = shalt.err (!%p578_p9)
}
  0x33   :  { %51 = dma.hbm_to_vmem [thread:$0]  %s788_s3, 1024, %s46_s18, [#allocation6], %s635_s11, %s635_s11, %s636_s12  }
  0x34   :  { %s639_s16 = smov [#allocation8]   ;;  %s582_s21 = scalar_lea.hbm %s790_s5, 1024 }
  0x35   :  { %s59_s17 = sshll.u32 %s639_s16, 4  ;;  %p583_p10 = scmp.ne.s32.totalorder %s790_s5, %s582_s21  ;;  %s60_s17 = int_to_ptr.vmem [resolvable:$true] %s59_s17 }
  0x36   :  { %p586_p11 = scmp.lt.u32.totalorder %s582_s21, %s790_s5 }
  0x38   :  { %p588_p12 = pnand %p586_p11, %p583_p10 }
  0x3a   :  { %591 = shalt.err (!%p588_p12)
}
  0x3b   :  { %s592_s1 = scalar_lea.vmem %s60_s17, 1024  ;;  %p597_p0 = scmp.lt.s32.totalorder %s60_s17, %s60_s17 }
  0x3c   :  { %p593_p13 = scmp.ne.s32.totalorder %s60_s17, %s592_s1  ;;  %p598_p1 = scmp.lt.s32.totalorder %s592_s1, %s592_s1 }
  0x3e   :  { %p599_p2 = por %p598_p1, %p597_p0 }
  0x40   :  { %p600_p3 = pnand %p599_p2, %p593_p13 }
  0x42   :  { %603 = shalt.err (!%p600_p3)
}
  0x43   :  { %65 = dma.hbm_to_vmem [thread:$0]  %s790_s5, 1024, %s60_s17, [#allocation9], %s635_s11, %s635_s11, %s636_s12  }
  0x44   :  { %626 = dma.done.wait [#allocation3], 128  }
  0x45   :  { %627 = vsyncadd [#allocation3], 4294967168 }
  0x46   :  { %628 = dma.done.wait [#allocation6], 1280  }
  0x47   :  { %629 = vsyncadd [#allocation6], 4294966016 }
  0x48   :  { %630 = dma.done.wait [#allocation9], 1024  }
  0x49   :  { %631 = vsyncadd [#allocation9], 4294966272  ;;  %v640_v0 = vmov 0.0   ;;  %vm641_vm0 = vmmov 0   ;;  %v498_v1 = vld [vmem:[#allocation5] sm:$0xff]   ;;  %v499_v2 = vld [vmem:[#allocation5 + $0x8] sm:$0xff]  }
  0x4a   :  { %441 = vmatprep.subr.bf16.mxu0 %v640_v0  ;;  %445 = vmatprep.mubr.msk.bf16.mxu0 %vm641_vm0, %v640_v0  ;;  %v81_v3 = vld [vmem:[#allocation2] sm:$0xff]  ;;  %v500_v4 = vld [vmem:[#allocation7] sm:$0xff]   ;;  %vm106_vm1 = vcmask 261120   ;;  %v502_v7 = vld [vmem:[#allocation7 + $0x10] sm:$0xff]   ;;  %s642_s28 = smov [#allocation10]  }
  0x4b   :  { %449 = vmatprep.subr.bf16.mxu1 %v640_v0  ;;  %465 = vmatprep.mubr.msk.bf16.mxu1 %vm641_vm0, %v640_v0  ;;  %v82_v5 = vpack.c.bf16 %v81_v3, %v81_v3  ;;  %v501_v6 = vld [vmem:[#allocation7 + $0x8] sm:$0xff]   ;;  %v503_v8 = vld [vmem:[#allocation7 + $0x18] sm:$0xff]   ;;  %v504_v9 = vld [vmem:[#allocation7 + $0x20] sm:$0xff]   ;;  %s387_s29 = sshll.u32 %s642_s28, 4  ;;  %s388_s29 = int_to_ptr.vmem [resolvable:$true] %s387_s29 }
  0x4c   :  { %442 = vmatpush3.bf16.msra.mxu0 %v498_v1  ;;  %450 = vmatpush3.bf16.msra.mxu1 %v500_v4  ;;  %v505_v10 = vld [vmem:[#allocation7 + $0x28] sm:$0xff]   ;;  %v506_v11 = vld [vmem:[#allocation7 + $0x30] sm:$0xff]   ;;  %v507_v12 = vld [vmem:[#allocation7 + $0x38] sm:$0xff]   ;;  %p609_p5 = scmp.lt.s32.totalorder %s388_s29, %s388_s29 }
  0x4d   :  { %443 = vmatprep.subr.bf16.mxu0 %v640_v0  ;;  %451 = vmatprep.subr.bf16.mxu1 %v640_v0  ;;  %v508_v13 = vld [vmem:[#allocation8] sm:$0xff]   ;;  %v509_v14 = vld [vmem:[#allocation8 + $0x8] sm:$0xff]   ;;  %v510_v15 = vld [vmem:[#allocation8 + $0x10] sm:$0xff]  }
  0x4e   :  { %v511_v16 = vld [vmem:[#allocation8 + $0x18] sm:$0xff]   ;;  %v512_v17 = vld [vmem:[#allocation8 + $0x20] sm:$0xff]   ;;  %v513_v18 = vld [vmem:[#allocation8 + $0x28] sm:$0xff]  }
  0x4f   :  { %v398_v19 = vld [vmem:[%s787_s2] ss:$0 sm:$0xff]  ;;  %v514_v28 = vld [vmem:[#allocation8 + $0x30] sm:$0xff]   ;;  %v515_v29 = vld [vmem:[#allocation8 + $0x38] sm:$0xff]  }
  0x50   :  { %444 = vmatpush3.bf16.msra.mxu0 %v499_v2  ;;  %452 = vmatpush3.bf16.msra.mxu1 %v501_v6  ;;  %v402_v30 = vld [vmem:[%s789_s4] ss:$0 sm:$0xff]  ;;  %s604_s4 = scalar_lea.vmem %s388_s29, 128 }
  0x51   :  { %469 = vmatprep.subr.bf16.mxu0 %v640_v0  ;;  %453 = vmatprep.subr.bf16.mxu1 %v640_v0  ;;  %v411_v39 = vld [vmem:[%s791_s6] ss:$0 sm:$0xff]  ;;  %p605_p4 = scmp.ne.s32.totalorder %s388_s29, %s604_s4  ;;  %p610_p6 = scmp.lt.s32.totalorder %s604_s4, %s604_s4 }
  0x53   :  { %446 = vmatmul.mubr.msk.bf16.vlgmr.msra.gmra.mrb[0].mxu0 %vm106_vm1, %v82_v5  ;;  %p611_p7 = por %p610_p6, %p609_p5 }
  0x54   :  { %485 = vmatprep.mubr.msk.bf16.mxu0 %vm641_vm0, %v640_v0  ;;  %454 = vmatpush3.bf16.msra.mxu1 %v502_v7 }
  0x55   :  { %455 = vmatprep.subr.bf16.mxu1 %v640_v0  ;;  %470 = vmatpush3.bf16.msra.mxu0 %v508_v13  ;;  %p612_p8 = pnand %p611_p7, %p605_p4 }
  0x56   :  { %471 = vmatprep.subr.bf16.mxu0 %v640_v0 }
  0x58   :  { %456 = vmatpush3.bf16.msra.mxu1 %v503_v8 }
  0x59   :  { %457 = vmatprep.subr.bf16.mxu1 %v640_v0  ;;  %472 = vmatpush3.bf16.msra.mxu0 %v509_v14 }
  0x5a   :  { %473 = vmatprep.subr.bf16.mxu0 %v640_v0 }
  0x5c   :  { %458 = vmatpush3.bf16.msra.mxu1 %v504_v9 }
  0x5d   :  { %459 = vmatprep.subr.bf16.mxu1 %v640_v0  ;;  %474 = vmatpush3.bf16.msra.mxu0 %v510_v15 }
  0x5e   :  { %475 = vmatprep.subr.bf16.mxu0 %v640_v0 }
  0x60   :  { %460 = vmatpush3.bf16.msra.mxu1 %v505_v10 }
  0x61   :  { %461 = vmatprep.subr.bf16.mxu1 %v640_v0  ;;  %476 = vmatpush3.bf16.msra.mxu0 %v511_v16 }
  0x62   :  { %477 = vmatprep.subr.bf16.mxu0 %v640_v0 }
  0x64   :  { %462 = vmatpush3.bf16.msra.mxu1 %v506_v11 }
  0x65   :  { %463 = vmatprep.subr.bf16.mxu1 %v640_v0  ;;  %478 = vmatpush3.bf16.msra.mxu0 %v512_v17 }
  0x66   :  { %479 = vmatprep.subr.bf16.mxu0 %v640_v0 }
  0x68   :  { %464 = vmatpush3.bf16.msra.mxu1 %v507_v12 }
  0x69   :  { %480 = vmatpush3.bf16.msra.mxu0 %v513_v18 }
  0x6a   :  { %481 = vmatprep.subr.bf16.mxu0 %v640_v0 }
  0x6d   :  { %482 = vmatpush3.bf16.msra.mxu0 %v514_v28 }
  0x6e   :  { %483 = vmatprep.subr.bf16.mxu0 %v640_v0 }
  0x71   :  { %484 = vmatpush3.bf16.msra.mxu0 %v515_v29 }
 0x126   :  { %v144_v20 = vpop.f32.mrb[0].mxu0 }
 0x127   :  { %v145_v21 = vadd.f32 %v398_v19, %v144_v20  ;;  %v447_v22 = vpop.f32.mrb[1].mxu0 }
 0x128   :  { %v147_v23 = vpop.f32.mrb[2].mxu0 }
 0x129   :  { %v150_v24 = vmul.f32 0.01, %v145_v21  ;;  %v448_v25 = vpop.f32.mrb[3].mxu0 }
 0x12b   :  { %v151_v26 = vmax.f32 %v145_v21, %v150_v24 }
 0x12d   :  { %v152_v27 = vpack.c.bf16 %v151_v26, %v151_v26 }
 0x12f   :  { %466 = vmatmul.mubr.bf16.vlgmr.msra.gmra.mrb[0].mxu1 %v152_v27 }
 0x202   :  { %v258_v31 = vpop.f32.mrb[0].mxu1 }
 0x203   :  { %v259_v32 = vadd.f32 %v402_v30, %v258_v31  ;;  %v467_v33 = vpop.f32.mrb[1].mxu1 }
 0x204   :  { %v261_v34 = vpop.f32.mrb[2].mxu1 }
 0x205   :  { %v264_v35 = vmul.f32 0.01, %v259_v32  ;;  %v468_v36 = vpop.f32.mrb[3].mxu1 }
 0x207   :  { %v265_v37 = vmax.f32 %v259_v32, %v264_v35 }
 0x209   :  { %v266_v38 = vpack.c.bf16 %v265_v37, %v265_v37 }
 0x20b   :  { %486 = vmatmul.mubr.bf16.vlgmr.msra.gmra.mrb[4].mxu0 %v266_v38 }
 0x2de   :  { %v372_v40 = vpop.f32.mrb[4].mxu0 }
 0x2df   :  { %v373_v41 = vadd.f32 %v411_v39, %v372_v40  ;;  %v487_v42 = vpop.f32.mrb[5].mxu0 }
 0x2e0   :  { %v375_v43 = vpop.f32.mrb[6].mxu0 }
 0x2e1   :  { %v378_v44 = vmul.f32 0.01, %v373_v41  ;;  %v488_v45 = vpop.f32.mrb[7].mxu0 }
 0x2e3   :  { %v379_v46 = vmax.f32 %v373_v41, %v378_v44 }
 0x2e5   :  { %380 = vst [vmem:[#allocation10] sm:$0xff] %v379_v46 }
 0x2e6   :  { %615 = shalt.err (!%p612_p8)
}
 0x2e7   :  { %s616_s8 = scalar_lea.hbm %s792_s7, 128 }
 0x2e8   :  { %p617_p9 = scmp.ne.s32.totalorder %s792_s7, %s616_s8  ;;  %p620_p10 = scmp.lt.u32.totalorder %s616_s8, %s792_s7 }
 0x2ea   :  { %p622_p11 = pnand %p620_p10, %p617_p9 }
 0x2ec   :  { %625 = shalt.err (!%p622_p11)
}
 0x2ed   :  { %390 = dma.vmem_to_hbm [thread:$0]  %s388_s29, 128, %s792_s7, [#allocation4]  }
 0x2ee   :  { %632 = dma.done.wait [#allocation4], 128  }
 0x2ef   :  { %633 = vsyncadd [#allocation4], 4294967168 }
 0x2f0   :  { %394 = vsyncpa [#allocation3], 1 }
 0x2f1   :  { %395 = vsyncpa [#allocation6], 1 }
 0x2f2   :  { %396 = vsyncpa [#allocation9], 1 }
 0x2f3   :  { %397 = vsyncpa [#allocation4], 1 }

// kernel: tpu_custom_call.1
= control target key start
LH: loop header
LB: loop body
LE: loop exit
PB: predicated region body
PF: predicated region fallthrough
CT: control target
= control target key end

     0   :  { %12 = vsyncpa [#allocation3], 0  ;;  %s785_s0 = inlined_call_operand.hbm [shape: f32[8,32], index: 0, kind: input, shape index: {}]   ;;  %s786_s1 = inlined_call_operand.hbm [shape: bf16[32,128], index: 1, kind: input, shape index: {}]   ;;  %s787_s2 = inlined_call_operand.vmem [shape: f32[1,128], index: 2, kind: input, shape index: {}]   ;;  %s788_s3 = inlined_call_operand.hbm [shape: bf16[128,128], index: 3, kind: input, shape index: {}]   ;;  %s789_s4 = inlined_call_operand.vmem [shape: f32[1,128], index: 4, kind: input, shape index: {}]   ;;  %s790_s5 = inlined_call_operand.hbm [shape: bf16[128,128], index: 5, kind: input, shape index: {}]   ;;  %s791_s6 = inlined_call_operand.vmem [shape: f32[1,128], index: 6, kind: input, shape index: {}]   ;;  %s792_s7 = inlined_call_operand.hbm [shape: f32[8,128], index: 7, kind: output, shape index: {}]  }
   0x1   :  { %13 = vsyncpa [#allocation6], 0 }
   0x2   :  { %14 = vsyncpa [#allocation9], 0 }
   0x3   :  { %15 = vsyncpa [#allocation4], 0  ;;  %s634_s24 = smov [#allocation5]   ;;  %s516_s28 = scalar_lea.hbm %s786_s1, 256 }
   0x4   :  { %s31_s25 = sshll.u32 %s634_s24, 4  ;;  %p517_p0 = scmp.ne.s32.totalorder %s786_s1, %s516_s28  ;;  %s32_s25 = int_to_ptr.vmem [resolvable:$true] %s31_s25 }
   0x5   :  { %p520_p1 = scmp.lt.u32.totalorder %s516_s28, %s786_s1 }
   0x7   :  { %p522_p2 = pnand %p520_p1, %p517_p0 }
   0x9   :  { %525 = shalt.err (!%p522_p2)
}
   0xa   :  { %s526_s10 = scalar_lea.vmem %s32_s25, 256  ;;  %p531_p4 = scmp.lt.s32.totalorder %s32_s25, %s32_s25 }
   0xb   :  { %p527_p3 = scmp.ne.s32.totalorder %s32_s25, %s526_s10  ;;  %p532_p5 = scmp.lt.s32.totalorder %s526_s10, %s526_s10 }
   0xd   :  { %p533_p6 = por %p532_p5, %p531_p4 }
   0xf   :  { %p534_p7 = pnand %p533_p6, %p527_p3 }
  0x11   :  { %537 = shalt.err (!%p534_p7)
}
  0x12   :  { %s635_s11 = smov 64   ;;  %s636_s12 = smov 4  }
  0x13   :  { %37 = dma.hbm_to_vmem [thread:$0]  %s786_s1, 256, %s32_s25, [#allocation6], %s635_s11, %s635_s11, %s636_s12  }
  0x14   :  { %s637_s15 = smov [#allocation2]   ;;  %s638_s17 = smov [#allocation7]  }
  0x15   :  { %s22_s16 = sshll.u32 %s637_s15, 4  ;;  %s45_s18 = sshll.u32 %s638_s17, 4  ;;  %s23_s16 = int_to_ptr.vmem [resolvable:$true] %s22_s16  ;;  %s46_s18 = int_to_ptr.vmem [resolvable:$true] %s45_s18 }
  0x16   :  { %s538_s21 = scalar_lea.hbm %s785_s0, 128 }
  0x17   :  { %p539_p8 = scmp.ne.s32.totalorder %s785_s0, %s538_s21  ;;  %p542_p9 = scmp.lt.u32.totalorder %s538_s21, %s785_s0 }
  0x19   :  { %p544_p10 = pnand %p542_p9, %p539_p8 }
  0x1b   :  { %547 = shalt.err (!%p544_p10)
}
  0x1c   :  { %s548_s1 = scalar_lea.vmem %s23_s16, 128  ;;  %p553_p12 = scmp.lt.s32.totalorder %s23_s16, %s23_s16 }
  0x1d   :  { %p549_p11 = scmp.ne.s32.totalorder %s23_s16, %s548_s1  ;;  %p554_p13 = scmp.lt.s32.totalorder %s548_s1, %s548_s1 }
  0x1f   :  { %p555_p0 = por %p554_p13, %p553_p12 }
  0x21   :  { %p556_p1 = pnand %p555_p0, %p549_p11 }
  0x23   :  { %559 = shalt.err (!%p556_p1)
}
  0x24   :  { %25 = dma.hbm_to_vmem [thread:$0]  %s785_s0, 128, %s23_s16, [#allocation3]  }
  0x25   :  { %s560_s30 = scalar_lea.hbm %s788_s3, 1024 }
  0x26   :  { %p561_p2 = scmp.ne.s32.totalorder %s788_s3, %s560_s30  ;;  %p564_p3 = scmp.lt.u32.totalorder %s560_s30, %s788_s3 }
  0x28   :  { %p566_p4 = pnand %p564_p3, %p561_p2 }
  0x2a   :  { %569 = shalt.err (!%p566_p4)
}
  0x2b   :  { %s570_s14 = scalar_lea.vmem %s46_s18, 1024  ;;  %p575_p6 = scmp.lt.s32.totalorder %s46_s18, %s46_s18 }
  0x2c   :  { %p571_p5 = scmp.ne.s32.totalorder %s46_s18, %s570_s14  ;;  %p576_p7 = scmp.lt.s32.totalorder %s570_s14, %s570_s14 }
  0x2e   :  { %p577_p8 = por %p576_p7, %p575_p6 }
  0x30   :  { %p578_p9 = pnand %p577_p8, %p571_p5 }
  0x32   :  { %581 = shalt.err (!%p578_p9)
}
  0x33   :  { %51 = dma.hbm_to_vmem [thread:$0]  %s788_s3, 1024, %s46_s18, [#allocation6], %s635_s11, %s635_s11, %s636_s12  }
  0x34   :  { %s639_s16 = smov [#allocation8]   ;;  %s582_s21 = scalar_lea.hbm %s790_s5, 1024 }
  0x35   :  { %s59_s17 = sshll.u32 %s639_s16, 4  ;;  %p583_p10 = scmp.ne.s32.totalorder %s790_s5, %s582_s21  ;;  %s60_s17 = int_to_ptr.vmem [resolvable:$true] %s59_s17 }
  0x36   :  { %p586_p11 = scmp.lt.u32.totalorder %s582_s21, %s790_s5 }
  0x38   :  { %p588_p12 = pnand %p586_p11, %p583_p10 }
  0x3a   :  { %591 = shalt.err (!%p588_p12)
}
  0x3b   :  { %s592_s1 = scalar_lea.vmem %s60_s17, 1024  ;;  %p597_p0 = scmp.lt.s32.totalorder %s60_s17, %s60_s17 }
  0x3c   :  { %p593_p13 = scmp.ne.s32.totalorder %s60_s17, %s592_s1  ;;  %p598_p1 = scmp.lt.s32.totalorder %s592_s1, %s592_s1 }
  0x3e   :  { %p599_p2 = por %p598_p1, %p597_p0 }
  0x40   :  { %p600_p3 = pnand %p599_p2, %p593_p13 }
  0x42   :  { %603 = shalt.err (!%p600_p3)
}
  0x43   :  { %65 = dma.hbm_to_vmem [thread:$0]  %s790_s5, 1024, %s60_s17, [#allocation9], %s635_s11, %s635_s11, %s636_s12  }
  0x44   :  { %626 = dma.done.wait [#allocation3], 128  }
  0x45   :  { %627 = vsyncadd [#allocation3], 4294967168 }
  0x46   :  { %628 = dma.done.wait [#allocation6], 1280  }
  0x47   :  { %629 = vsyncadd [#allocation6], 4294966016 }
  0x48   :  { %630 = dma.done.wait [#allocation9], 1024  }
  0x49   :  { %631 = vsyncadd [#allocation9], 4294966272  ;;  %v640_v0 = vmov 0.0   ;;  %vm641_vm0 = vmmov 0   ;;  %v498_v1 = vld [vmem:[#allocation5] sm:$0xff]   ;;  %v499_v2 = vld [vmem:[#allocation5 + $0x8] sm:$0xff]  }
  0x4a   :  { %441 = vmatprep.subr.bf16.mxu0 %v640_v0  ;;  %445 = vmatprep.mubr.msk.bf16.mxu0 %vm641_vm0, %v640_v0  ;;  %v81_v3 = vld [vmem:[#allocation2] sm:$0xff]  ;;  %v500_v4 = vld [vmem:[#allocation7] sm:$0xff]   ;;  %vm106_vm1 = vcmask 261120   ;;  %v502_v7 = vld [vmem:[#allocation7 + $0x10] sm:$0xff]   ;;  %s642_s28 = smov [#allocation10]  }
  0x4b   :  { %449 = vmatprep.subr.bf16.mxu1 %v640_v0  ;;  %465 = vmatprep.mubr.msk.bf16.mxu1 %vm641_vm0, %v640_v0  ;;  %v82_v5 = vpack.c.bf16 %v81_v3, %v81_v3  ;;  %v501_v6 = vld [vmem:[#allocation7 + $0x8] sm:$0xff]   ;;  %v503_v8 = vld [vmem:[#allocation7 + $0x18] sm:$0xff]   ;;  %v504_v9 = vld [vmem:[#allocation7 + $0x20] sm:$0xff]   ;;  %s387_s29 = sshll.u32 %s642_s28, 4  ;;  %s388_s29 = int_to_ptr.vmem [resolvable:$true] %s387_s29 }
  0x4c   :  { %442 = vmatpush3.bf16.msra.mxu0 %v498_v1  ;;  %450 = vmatpush3.bf16.msra.mxu1 %v500_v4  ;;  %v505_v10 = vld [vmem:[#allocation7 + $0x28] sm:$0xff]   ;;  %v506_v11 = vld [vmem:[#allocation7 + $0x30] sm:$0xff]   ;;  %v507_v12 = vld [vmem:[#allocation7 + $0x38] sm:$0xff]   ;;  %p609_p5 = scmp.lt.s32.totalorder %s388_s29, %s388_s29 }
  0x4d   :  { %443 = vmatprep.subr.bf16.mxu0 %v640_v0  ;;  %451 = vmatprep.subr.bf16.mxu1 %v640_v0  ;;  %v508_v13 = vld [vmem:[#allocation8] sm:$0xff]   ;;  %v509_v14 = vld [vmem:[#allocation8 + $0x8] sm:$0xff]   ;;  %v510_v15 = vld [vmem:[#allocation8 + $0x10] sm:$0xff]  }
  0x4e   :  { %v511_v16 = vld [vmem:[#allocation8 + $0x18] sm:$0xff]   ;;  %v512_v17 = vld [vmem:[#allocation8 + $0x20] sm:$0xff]   ;;  %v513_v18 = vld [vmem:[#allocation8 + $0x28] sm:$0xff]  }
  0x4f   :  { %v398_v19 = vld [vmem:[%s787_s2] ss:$0 sm:$0xff]  ;;  %v514_v28 = vld [vmem:[#allocation8 + $0x30] sm:$0xff]   ;;  %v515_v29 = vld [vmem:[#allocation8 + $0x38] sm:$0xff]  }
  0x50   :  { %444 = vmatpush3.bf16.msra.mxu0 %v499_v2  ;;  %452 = vmatpush3.bf16.msra.mxu1 %v501_v6  ;;  %v402_v30 = vld [vmem:[%s789_s4] ss:$0 sm:$0xff]  ;;  %s604_s4 = scalar_lea.vmem %s388_s29, 128 }
  0x51   :  { %469 = vmatprep.subr.bf16.mxu0 %v640_v0  ;;  %453 = vmatprep.subr.bf16.mxu1 %v640_v0  ;;  %v411_v39 = vld [vmem:[%s791_s6] ss:$0 sm:$0xff]  ;;  %p605_p4 = scmp.ne.s32.totalorder %s388_s29, %s604_s4  ;;  %p610_p6 = scmp.lt.s32.totalorder %s604_s4, %s604_s4 }
  0x53   :  { %446 = vmatmul.mubr.msk.bf16.vlgmr.msra.gmra.mrb[0].mxu0 %vm106_vm1, %v82_v5  ;;  %p611_p7 = por %p610_p6, %p609_p5 }
  0x54   :  { %485 = vmatprep.mubr.msk.bf16.mxu0 %vm641_vm0, %v640_v0  ;;  %454 = vmatpush3.bf16.msra.mxu1 %v502_v7 }
  0x55   :  { %455 = vmatprep.subr.bf16.mxu1 %v640_v0  ;;  %470 = vmatpush3.bf16.msra.mxu0 %v508_v13  ;;  %p612_p8 = pnand %p611_p7, %p605_p4 }
  0x56   :  { %471 = vmatprep.subr.bf16.mxu0 %v640_v0 }
  0x58   :  { %456 = vmatpush3.bf16.msra.mxu1 %v503_v8 }
  0x59   :  { %457 = vmatprep.subr.bf16.mxu1 %v640_v0  ;;  %472 = vmatpush3.bf16.msra.mxu0 %v509_v14 }
  0x5a   :  { %473 = vmatprep.subr.bf16.mxu0 %v640_v0 }
  0x5c   :  { %458 = vmatpush3.bf16.msra.mxu1 %v504_v9 }
  0x5d   :  { %459 = vmatprep.subr.bf16.mxu1 %v640_v0  ;;  %474 = vmatpush3.bf16.msra.mxu0 %v510_v15 }
  0x5e   :  { %475 = vmatprep.subr.bf16.mxu0 %v640_v0 }
  0x60   :  { %460 = vmatpush3.bf16.msra.mxu1 %v505_v10 }
  0x61   :  { %461 = vmatprep.subr.bf16.mxu1 %v640_v0  ;;  %476 = vmatpush3.bf16.msra.mxu0 %v511_v16 }
  0x62   :  { %477 = vmatprep.subr.bf16.mxu0 %v640_v0 }
  0x64   :  { %462 = vmatpush3.bf16.msra.mxu1 %v506_v11 }
  0x65   :  { %463 = vmatprep.subr.bf16.mxu1 %v640_v0  ;;  %478 = vmatpush3.bf16.msra.mxu0 %v512_v17 }
  0x66   :  { %479 = vmatprep.subr.bf16.mxu0 %v640_v0 }
  0x68   :  { %464 = vmatpush3.bf16.msra.mxu1 %v507_v12 }
  0x69   :  { %480 = vmatpush3.bf16.msra.mxu0 %v513_v18 }
  0x6a   :  { %481 = vmatprep.subr.bf16.mxu0 %v640_v0 }
  0x6d   :  { %482 = vmatpush3.bf16.msra.mxu0 %v514_v28 }
  0x6e   :  { %483 = vmatprep.subr.bf16.mxu0 %v640_v0 }
  0x71   :  { %484 = vmatpush3.bf16.msra.mxu0 %v515_v29 }
 0x126   :  { %v144_v20 = vpop.f32.mrb[0].mxu0 }
 0x127   :  { %v145_v21 = vadd.f32 %v398_v19, %v144_v20  ;;  %v447_v22 = vpop.f32.mrb[1].mxu0 }
 0x128   :  { %v147_v23 = vpop.f32.mrb[2].mxu0 }
 0x129   :  { %v150_v24 = vmul.f32 0.01, %v145_v21  ;;  %v448_v25 = vpop.f32.mrb[3].mxu0 }
 0x12b   :  { %v151_v26 = vmax.f32 %v145_v21, %v150_v24 }
 0x12d   :  { %v152_v27 = vpack.c.bf16 %v151_v26, %v151_v26 }
 0x12f   :  { %466 = vmatmul.mubr.bf16.vlgmr.msra.gmra.mrb[0].mxu1 %v152_v27 }
 0x202   :  { %v258_v31 = vpop.f32.mrb[0].mxu1 }
 0x203   :  { %v259_v32 = vadd.f32 %v402_v30, %v258_v31  ;;  %v467_v33 = vpop.f32.mrb[1].mxu1 }
 0x204   :  { %v261_v34 = vpop.f32.mrb[2].mxu1 }
 0x205   :  { %v264_v35 = vmul.f32 0.01, %v259_v32  ;;  %v468_v36 = vpop.f32.mrb[3].mxu1 }
 0x207   :  { %v265_v37 = vmax.f32 %v259_v32, %v264_v35 }
 0x209   :  { %v266_v38 = vpack.c.bf16 %v265_v37, %v265_v37 }
 0x20b   :  { %486 = vmatmul.mubr.bf16.vlgmr.msra.gmra.mrb[4].mxu0 %v266_v38 }
 0x2de   :  { %v372_v40 = vpop.f32.mrb[4].mxu0 }
 0x2df   :  { %v373_v41 = vadd.f32 %v411_v39, %v372_v40  ;;  %v487_v42 = vpop.f32.mrb[5].mxu0 }
 0x2e0   :  { %v375_v43 = vpop.f32.mrb[6].mxu0 }
 0x2e1   :  { %v378_v44 = vmul.f32 0.01, %v373_v41  ;;  %v488_v45 = vpop.f32.mrb[7].mxu0 }
 0x2e3   :  { %v379_v46 = vmax.f32 %v373_v41, %v378_v44 }
 0x2e5   :  { %380 = vst [vmem:[#allocation10] sm:$0xff] %v379_v46 }
 0x2e6   :  { %615 = shalt.err (!%p612_p8)
}
 0x2e7   :  { %s616_s8 = scalar_lea.hbm %s792_s7, 128 }
 0x2e8   :  { %p617_p9 = scmp.ne.s32.totalorder %s792_s7, %s616_s8  ;;  %p620_p10 = scmp.lt.u32.totalorder %s616_s8, %s792_s7 }
 0x2ea   :  { %p622_p11 = pnand %p620_p10, %p617_p9 }
 0x2ec   :  { %625 = shalt.err (!%p622_p11)
}
 0x2ed   :  { %390 = dma.vmem_to_hbm [thread:$0]  %s388_s29, 128, %s792_s7, [#allocation4]  }
 0x2ee   :  { %632 = dma.done.wait [#allocation4], 128  }
 0x2ef   :  { %633 = vsyncadd [#allocation4], 4294967168 }
 0x2f0   :  { %394 = vsyncpa [#allocation3], 1 }
 0x2f1   :  { %395 = vsyncpa [#allocation6], 1 }
 0x2f2   :  { %396 = vsyncpa [#allocation9], 1 }
 0x2f3   :  { %397 = vsyncpa [#allocation4], 1 }

</bundles_post_ra>
